<compile_context>
chip_gen: v7x
topology: tpu7x:2x2x1
jax: 0.10.0
libtpu: 0.0.40
codegen_flags: <defaults>
</compile_context>

<pallas_src>
import functools

import jax
import jax.numpy as jnp
from jax.experimental import pallas as pl
from jax.experimental.pallas import tpu as pltpu

INPUT_SIZE = 512
H1, H2, H3, OUT = 256, 128, 64, 3
OUT_PAD = 128  # lane-dense output slab (unmasked vst, full-lane writeback DMA)


def _round_up(x, m):
    return (x + m - 1) // m * m


def _mlp_kernel(x_ref, w1_ref, b1_ref, w2_ref, b2_ref, w3_ref, b3_ref,
                w4_ref, b4_ref, o_ref):
    # All matmuls: bf16 operands on the MXU, f32 accumulation.
    # Layer 1: Linear(512, 256) + ReLU   (Dropout(0.3) -> identity in eval)
    h = jnp.dot(x_ref[...], w1_ref[...], preferred_element_type=jnp.float32)
    h = jnp.maximum(h + b1_ref[...], 0.0)
    # Layer 2: Linear(256, 128) + ReLU   (Dropout(0.2) -> identity)
    h = jnp.dot(h.astype(jnp.bfloat16), w2_ref[...],
                preferred_element_type=jnp.float32)
    h = jnp.maximum(h + b2_ref[...], 0.0)
    # Layer 3: Linear(128, 64) + ReLU    (Dropout(0.1) -> identity)
    h = jnp.dot(h.astype(jnp.bfloat16), w3_ref[...],
                preferred_element_type=jnp.float32)
    h = jnp.maximum(h + b3_ref[...], 0.0)
    # Layer 4: Linear(64, 3) padded to 128 output lanes (logits in cols 0..2)
    out = jnp.dot(h.astype(jnp.bfloat16), w4_ref[...],
                  preferred_element_type=jnp.float32) + b4_ref[...]
    o_ref[...] = out.astype(o_ref.dtype)


@functools.partial(jax.jit, static_argnames=("block_m",))
def text_classifier_forward(x, params, *, block_m=512):
    """x: (B, INPUT_SIZE) float32; params: dict of (in, out) weights + (1, out) biases."""
    B, D = x.shape
    assert D == INPUT_SIZE

    # --- choose batch tile (static, shapes are trace-time constants) ---------
    bm = min(block_m, _round_up(B, 8))
    # Keep >= 2 grid steps when the batch allows it so the "parallel" axis can
    # be sharded across both v7x TensorCores (harmless on v5e/v6e).
    if B > 8 and _round_up(B, bm) // bm < 2:
        bm = max(8, _round_up(pl.cdiv(B, 2), 8))
    B_pad = _round_up(B, bm)
    grid = (B_pad // bm,)

    # --- operand prep: bf16 MXU inputs, zero-pad batch and final layer -------
    x_bf = x.astype(jnp.bfloat16)
    if B_pad != B:
        x_bf = jnp.pad(x_bf, ((0, B_pad - B), (0, 0)))

    w1 = params["w1"].astype(jnp.bfloat16)
    w2 = params["w2"].astype(jnp.bfloat16)
    w3 = params["w3"].astype(jnp.bfloat16)
    w4 = jnp.pad(params["w4"], ((0, 0), (0, OUT_PAD - OUT))).astype(jnp.bfloat16)
    b1, b2, b3 = params["b1"], params["b2"], params["b3"]
    b4 = jnp.pad(params["b4"], ((0, 0), (0, OUT_PAD - OUT)))

    def rep(i):  # weights/biases: resident, same block every grid step
        return (0, 0)

    def bat(i):  # batch-tiled arrays
        return (i, 0)

    in_specs = [
        pl.BlockSpec((bm, INPUT_SIZE), bat),
        pl.BlockSpec((INPUT_SIZE, H1), rep),
        pl.BlockSpec((1, H1), rep),
        pl.BlockSpec((H1, H2), rep),
        pl.BlockSpec((1, H2), rep),
        pl.BlockSpec((H2, H3), rep),
        pl.BlockSpec((1, H3), rep),
        pl.BlockSpec((H3, OUT_PAD), rep),
        pl.BlockSpec((1, OUT_PAD), rep),
    ]
    out_specs = pl.BlockSpec((bm, OUT_PAD), bat)

    flops = 2 * B_pad * (INPUT_SIZE * H1 + H1 * H2 + H2 * H3 + H3 * OUT_PAD)
    weight_bytes = 2 * (INPUT_SIZE * H1 + H1 * H2 + H2 * H3 + H3 * OUT_PAD)
    bias_bytes = 4 * (H1 + H2 + H3 + OUT_PAD)
    bytes_accessed = (B_pad * INPUT_SIZE * 2      # bf16 x stream
                      + weight_bytes + bias_bytes
                      + B_pad * OUT_PAD * 4)      # f32 output slab

    out = pl.pallas_call(
        _mlp_kernel,
        out_shape=jax.ShapeDtypeStruct((B_pad, OUT_PAD), jnp.float32),
        grid_spec=pltpu.PrefetchScalarGridSpec(
            num_scalar_prefetch=0,
            grid=grid,
            in_specs=in_specs,
            out_specs=out_specs,
        ),
        compiler_params=pltpu.CompilerParams(
            dimension_semantics=("parallel",)),
        cost_estimate=pl.CostEstimate(
            flops=flops, transcendentals=0, bytes_accessed=bytes_accessed),
    )(x_bf, w1, b1, w2, b2, w3, b3, w4, b4)

    return out[:B, :OUT]


def init_params(key):
    """PyTorch nn.Linear default init (U(-k, k), k = 1/sqrt(fan_in)).

    Weights stored pre-transposed: (in_features, out_features); biases (1, out).
    """
    dims = [(INPUT_SIZE, H1), (H1, H2), (H2, H3), (H3, OUT)]
    params = {}
    keys = jax.random.split(key, 2 * len(dims))
    for idx, (fan_in, fan_out) in enumerate(dims):
        k = 1.0 / jnp.sqrt(jnp.float32(fan_in))
        params[f"w{idx + 1}"] = jax.random.uniform(
            keys[2 * idx], (fan_in, fan_out), dtype=jnp.float32, minval=-k, maxval=k)
        params[f"b{idx + 1}"] = jax.random.uniform(
            keys[2 * idx + 1], (1, fan_out), dtype=jnp.float32, minval=-k, maxval=k)
    return params


def reference_forward(x, params):
    """Pure-JAX f32 reference of the eval-mode forward pass."""
    h = jnp.maximum(x @ params["w1"] + params["b1"], 0.0)
    h = jnp.maximum(h @ params["w2"] + params["b2"], 0.0)
    h = jnp.maximum(h @ params["w3"] + params["b3"], 0.0)
    return h @ params["w4"] + params["b4"]


def reference_forward_bf16(x, params):
    """Reference that mirrors the kernel's bf16-operand / f32-accumulate numerics."""
    bf = jnp.bfloat16
    h = jnp.dot(x.astype(bf), params["w1"].astype(bf),
                preferred_element_type=jnp.float32)
    h = jnp.maximum(h + params["b1"], 0.0)
    h = jnp.dot(h.astype(bf), params["w2"].astype(bf),
                preferred_element_type=jnp.float32)
    h = jnp.maximum(h + params["b2"], 0.0)
    h = jnp.dot(h.astype(bf), params["w3"].astype(bf),
                preferred_element_type=jnp.float32)
    h = jnp.maximum(h + params["b3"], 0.0)
    return jnp.dot(h.astype(bf), params["w4"].astype(bf),
                   preferred_element_type=jnp.float32) + params["b4"]


if __name__ == "__main__":
    key = jax.random.PRNGKey(0)
    kp, kx = jax.random.split(key)
    params = init_params(kp)

    batch = 16
    x = jax.random.normal(kx, (batch, INPUT_SIZE), dtype=jnp.float32)

    out = text_classifier_forward(x, params)
    out = jax.block_until_ready(out)
    assert out.shape == (batch, OUT)

    # Exact-numerics check (bf16 operands, f32 accumulation mirrored).
    ref_bf = reference_forward_bf16(x, params)
    assert jnp.allclose(out, ref_bf, atol=1e-3, rtol=1e-3), "mismatch vs bf16 reference"

    # Semantic sanity check against the pure-f32 PyTorch-equivalent forward.
    ref_f32 = reference_forward(x, params)
    assert jnp.allclose(out, ref_f32, atol=5e-2, rtol=5e-2), "mismatch vs f32 reference"

    print("KERNEL_OK")
</pallas_src>

<mosaic_0001>
module attributes {stable_mosaic.version = 11 : i64} {
  func.func @_mlp_kernel(%arg0: i32, %arg1: memref<8x512xbf16, #tpu.memory_space<vmem>>, %arg2: memref<512x256xbf16, #tpu.memory_space<vmem>>, %arg3: memref<1x256xf32, #tpu.memory_space<vmem>>, %arg4: memref<256x128xbf16, #tpu.memory_space<vmem>>, %arg5: memref<1x128xf32, #tpu.memory_space<vmem>>, %arg6: memref<128x64xbf16, #tpu.memory_space<vmem>>, %arg7: memref<1x64xf32, #tpu.memory_space<vmem>>, %arg8: memref<64x128xbf16, #tpu.memory_space<vmem>>, %arg9: memref<1x128xf32, #tpu.memory_space<vmem>>, %arg10: memref<8x128xf32, #tpu.memory_space<vmem>>) attributes {dimension_semantics = [#tpu.dimension_semantics<parallel>], iteration_bounds = array<i64: 2>, scalar_prefetch = 0 : i64, scratch_operands = 0 : i64, tpu.core_type = #tpu.core_type<tc>, window_params = [{transform_indices = @transform_0, window_bounds = array<i64: 8, 512>}, {pipeline_mode = #tpu.pipeline_mode<synchronous>, transform_indices = @transform_1, window_bounds = array<i64: 512, 256>}, {pipeline_mode = #tpu.pipeline_mode<synchronous>, transform_indices = @transform_2, window_bounds = array<i64: 1, 256>}, {pipeline_mode = #tpu.pipeline_mode<synchronous>, transform_indices = @transform_3, window_bounds = array<i64: 256, 128>}, {pipeline_mode = #tpu.pipeline_mode<synchronous>, transform_indices = @transform_4, window_bounds = array<i64: 1, 128>}, {pipeline_mode = #tpu.pipeline_mode<synchronous>, transform_indices = @transform_5, window_bounds = array<i64: 128, 64>}, {pipeline_mode = #tpu.pipeline_mode<synchronous>, transform_indices = @transform_6, window_bounds = array<i64: 1, 64>}, {pipeline_mode = #tpu.pipeline_mode<synchronous>, transform_indices = @transform_7, window_bounds = array<i64: 64, 128>}, {pipeline_mode = #tpu.pipeline_mode<synchronous>, transform_indices = @transform_8, window_bounds = array<i64: 1, 128>}, {transform_indices = @transform_9, window_bounds = array<i64: 8, 128>}]} {
    %c0 = arith.constant 0 : index
    %c0_0 = arith.constant 0 : index
    %0 = vector.load %arg1[%c0, %c0_0] : memref<8x512xbf16, #tpu.memory_space<vmem>>, vector<8x512xbf16>
    %c0_1 = arith.constant 0 : index
    %c0_2 = arith.constant 0 : index
    %1 = vector.load %arg2[%c0_1, %c0_2] : memref<512x256xbf16, #tpu.memory_space<vmem>>, vector<512x256xbf16>
    %cst = arith.constant dense<0.000000e+00> : vector<8x256xf32>
    %2 = tpu.matmul %0, %1, %cst {dimension_numbers = #tpu.dot_dimension_numbers<[1], [0], [0], [1], [0, 0, 1, 1], [], []>} : vector<8x512xbf16>, vector<512x256xbf16>, vector<8x256xf32> -> vector<8x256xf32>
    %c0_3 = arith.constant 0 : index
    %c0_4 = arith.constant 0 : index
    %3 = vector.load %arg3[%c0_3, %c0_4] : memref<1x256xf32, #tpu.memory_space<vmem>>, vector<1x256xf32>
    %4 = vector.broadcast %3 : vector<1x256xf32> to vector<8x256xf32>
    %5 = arith.addf %2, %4 : vector<8x256xf32>
    %cst_5 = arith.constant 0.000000e+00 : f32
    %6 = vector.broadcast %cst_5 : f32 to vector<8x256xf32>
    %7 = arith.maximumf %5, %6 : vector<8x256xf32>
    %8 = arith.truncf %7 : vector<8x256xf32> to vector<8x256xbf16>
    %c0_6 = arith.constant 0 : index
    %c0_7 = arith.constant 0 : index
    %9 = vector.load %arg4[%c0_6, %c0_7] : memref<256x128xbf16, #tpu.memory_space<vmem>>, vector<256x128xbf16>
    %cst_8 = arith.constant dense<0.000000e+00> : vector<8x128xf32>
    %10 = tpu.matmul %8, %9, %cst_8 {dimension_numbers = #tpu.dot_dimension_numbers<[1], [0], [0], [1], [0, 0, 1, 1], [], []>} : vector<8x256xbf16>, vector<256x128xbf16>, vector<8x128xf32> -> vector<8x128xf32>
    %c0_9 = arith.constant 0 : index
    %c0_10 = arith.constant 0 : index
    %11 = vector.load %arg5[%c0_9, %c0_10] : memref<1x128xf32, #tpu.memory_space<vmem>>, vector<1x128xf32>
    %12 = vector.broadcast %11 : vector<1x128xf32> to vector<8x128xf32>
    %13 = arith.addf %10, %12 : vector<8x128xf32>
    %cst_11 = arith.constant 0.000000e+00 : f32
    %14 = vector.broadcast %cst_11 : f32 to vector<8x128xf32>
    %15 = arith.maximumf %13, %14 : vector<8x128xf32>
    %16 = arith.truncf %15 : vector<8x128xf32> to vector<8x128xbf16>
    %c0_12 = arith.constant 0 : index
    %c0_13 = arith.constant 0 : index
    %17 = vector.load %arg6[%c0_12, %c0_13] : memref<128x64xbf16, #tpu.memory_space<vmem>>, vector<128x64xbf16>
    %cst_14 = arith.constant dense<0.000000e+00> : vector<8x64xf32>
    %18 = tpu.matmul %16, %17, %cst_14 {dimension_numbers = #tpu.dot_dimension_numbers<[1], [0], [0], [1], [0, 0, 1, 1], [], []>} : vector<8x128xbf16>, vector<128x64xbf16>, vector<8x64xf32> -> vector<8x64xf32>
    %c0_15 = arith.constant 0 : index
    %c0_16 = arith.constant 0 : index
    %19 = vector.load %arg7[%c0_15, %c0_16] : memref<1x64xf32, #tpu.memory_space<vmem>>, vector<1x64xf32>
    %20 = vector.broadcast %19 : vector<1x64xf32> to vector<8x64xf32>
    %21 = arith.addf %18, %20 : vector<8x64xf32>
    %cst_17 = arith.constant 0.000000e+00 : f32
    %22 = vector.broadcast %cst_17 : f32 to vector<8x64xf32>
    %23 = arith.maximumf %21, %22 : vector<8x64xf32>
    %24 = arith.truncf %23 : vector<8x64xf32> to vector<8x64xbf16>
    %c0_18 = arith.constant 0 : index
    %c0_19 = arith.constant 0 : index
    %25 = vector.load %arg8[%c0_18, %c0_19] : memref<64x128xbf16, #tpu.memory_space<vmem>>, vector<64x128xbf16>
    %cst_20 = arith.constant dense<0.000000e+00> : vector<8x128xf32>
    %26 = tpu.matmul %24, %25, %cst_20 {dimension_numbers = #tpu.dot_dimension_numbers<[1], [0], [0], [1], [0, 0, 1, 1], [], []>} : vector<8x64xbf16>, vector<64x128xbf16>, vector<8x128xf32> -> vector<8x128xf32>
    %c0_21 = arith.constant 0 : index
    %c0_22 = arith.constant 0 : index
    %27 = vector.load %arg9[%c0_21, %c0_22] : memref<1x128xf32, #tpu.memory_space<vmem>>, vector<1x128xf32>
    %28 = vector.broadcast %27 : vector<1x128xf32> to vector<8x128xf32>
    %29 = arith.addf %26, %28 : vector<8x128xf32>
    %c0_23 = arith.constant 0 : index
    %c0_24 = arith.constant 0 : index
    %30 = vector.load %arg10[%c0_23, %c0_24] : memref<8x128xf32, #tpu.memory_space<vmem>>, vector<8x128xf32>
    tpu.vector_store %arg10[%c0_23, %c0_24], %29 {strides = array<i32>} : memref<8x128xf32, #tpu.memory_space<vmem>>, vector<8x128xf32>,
    return
  }
  func.func @transform_0(%arg0: i32) -> (i32, i32) {
    %c0_i32 = arith.constant 0 : i32
    %c0_i32_0 = arith.constant 0 : i32
    return %arg0, %c0_i32 : i32, i32
  }
  func.func @transform_1(%arg0: i32) -> (i32, i32) {
    %c0_i32 = arith.constant 0 : i32
    %c0_i32_0 = arith.constant 0 : i32
    %c0_i32_1 = arith.constant 0 : i32
    return %c0_i32, %c0_i32_0 : i32, i32
  }
  func.func @transform_2(%arg0: i32) -> (i32, i32) {
    %c0_i32 = arith.constant 0 : i32
    %c0_i32_0 = arith.constant 0 : i32
    %c0_i32_1 = arith.constant 0 : i32
    return %c0_i32, %c0_i32_0 : i32, i32
  }
  func.func @transform_3(%arg0: i32) -> (i32, i32) {
    %c0_i32 = arith.constant 0 : i32
    %c0_i32_0 = arith.constant 0 : i32
    %c0_i32_1 = arith.constant 0 : i32
    return %c0_i32, %c0_i32_0 : i32, i32
  }
  func.func @transform_4(%arg0: i32) -> (i32, i32) {
    %c0_i32 = arith.constant 0 : i32
    %c0_i32_0 = arith.constant 0 : i32
    %c0_i32_1 = arith.constant 0 : i32
    return %c0_i32, %c0_i32_0 : i32, i32
  }
  func.func @transform_5(%arg0: i32) -> (i32, i32) {
    %c0_i32 = arith.constant 0 : i32
    %c0_i32_0 = arith.constant 0 : i32
    %c0_i32_1 = arith.constant 0 : i32
    return %c0_i32, %c0_i32_0 : i32, i32
  }
  func.func @transform_6(%arg0: i32) -> (i32, i32) {
    %c0_i32 = arith.constant 0 : i32
    %c0_i32_0 = arith.constant 0 : i32
    %c0_i32_1 = arith.constant 0 : i32
    return %c0_i32, %c0_i32_0 : i32, i32
  }
  func.func @transform_7(%arg0: i32) -> (i32, i32) {
    %c0_i32 = arith.constant 0 : i32
    %c0_i32_0 = arith.constant 0 : i32
    %c0_i32_1 = arith.constant 0 : i32
    return %c0_i32, %c0_i32_0 : i32, i32
  }
  func.func @transform_8(%arg0: i32) -> (i32, i32) {
    %c0_i32 = arith.constant 0 : i32
    %c0_i32_0 = arith.constant 0 : i32
    %c0_i32_1 = arith.constant 0 : i32
    return %c0_i32, %c0_i32_0 : i32, i32
  }
  func.func @transform_9(%arg0: i32) -> (i32, i32) {
    %c0_i32 = arith.constant 0 : i32
    %c0_i32_0 = arith.constant 0 : i32
    return %arg0, %c0_i32 : i32, i32
  }
}

</mosaic_0001>

<bundles_post_ra>
// kernel: text_classifier_forward.1
= control target key start
LH: loop header
LB: loop body
LE: loop exit
PB: predicated region body
PF: predicated region fallthrough
CT: control target
= control target key end

     0   :  { %s1640_s30 = smov 0   ;;  %s1979_s0 = inlined_call_operand.vmem [shape: bf16[16,512], index: 0, kind: input, shape index: {}]   ;;  %s1980_s1 = inlined_call_operand.vmem [shape: bf16[512,256], index: 1, kind: input, shape index: {}]   ;;  %s1981_s2 = inlined_call_operand.vmem [shape: f32[1,256], index: 2, kind: input, shape index: {}]   ;;  %s1982_s3 = inlined_call_operand.vmem [shape: bf16[256,128], index: 3, kind: input, shape index: {}]   ;;  %s1983_s4 = inlined_call_operand.vmem [shape: f32[1,128], index: 4, kind: input, shape index: {}]   ;;  %s1984_s5 = inlined_call_operand.vmem [shape: bf16[128,64], index: 5, kind: input, shape index: {}]   ;;  %s1985_s6 = inlined_call_operand.vmem [shape: f32[1,64], index: 6, kind: input, shape index: {}]   ;;  %s1986_s7 = inlined_call_operand.vmem [shape: bf16[64,128], index: 7, kind: input, shape index: {}]   ;;  %s1987_s8 = inlined_call_operand.vmem [shape: f32[1,128], index: 8, kind: input, shape index: {}]   ;;  %s1988_s9 = inlined_call_operand.vmem [shape: f32[16,128], index: 9, kind: output, shape index: {}]  }
   0x1 LB: > { %s1257_s10 = sadd.s32 4294967295, %s1586_s30   ;;  %p1261_p0 = scmp.ge.s32.totalorder %s1586_s30, 1  ;;  %s1586_s30 = sphi %s1640_s30, %s19_s30  }
   0x2   : > { %p287_p1 = scmp.lt.s32.totalorder %s1586_s30, 3 }
   0x4   : > { %p288_p2 = pnand %p1261_p0, %p287_p1 }
   0x5   : > { %v1452_v0 = vld [vmem:[%s1980_s1 + $0x4] ss:$8 sps:$4 sm:$0xff] (!%p288_p2)   ;;  %v1454_v1 = vld [vmem:[%s1980_s1] ss:$8 sps:$4 sm:$0xff] (!%p288_p2)   ;;  %v1455_v2 = vld [vmem:[%s1980_s1 + $0x14] ss:$8 sps:$4 sm:$0xff] (!%p288_p2)  }
   0x6   : > { %291 = sbr.rel (%p288_p2) target bundleno = 1008 (0x3f0), region = 56  ;;  %744 = vmatprep.subr.bf16.mxu0 (!%p288_p2), %v1452_v0  ;;  %v1457_v3 = vld [vmem:[%s1980_s1 + $0x10] ss:$8 sps:$4 sm:$0xff] (!%p288_p2)   ;;  %v1458_v4 = vld [vmem:[%s1980_s1 + $0x24] ss:$8 sps:$4 sm:$0xff] (!%p288_p2)   ;;  %p322_p3 = scmp.lt.s32.totalorder (!%p288_p2), %s1257_s10, 1 }
   0x7   : > { %745 = vmatpush1.bf16.msra.mxu0 (!%p288_p2), %v1454_v1  ;;  %v1460_v5 = vld [vmem:[%s1980_s1 + $0x20] ss:$8 sps:$4 sm:$0xff] (!%p288_p2)   ;;  %v1461_v6 = vld [vmem:[%s1980_s1 + $0x34] ss:$8 sps:$4 sm:$0xff] (!%p288_p2)   ;;  %v1463_v7 = vld [vmem:[%s1980_s1 + $0x30] ss:$8 sps:$4 sm:$0xff] (!%p288_p2)  }
   0x8   : > { %746 = vmatprep.subr.bf16.mxu0 (!%p288_p2), %v1455_v2  ;;  %v1464_v8 = vld [vmem:[%s1980_s1 + $0x44] ss:$8 sps:$4 sm:$0xff] (!%p288_p2)   ;;  %v1466_v9 = vld [vmem:[%s1980_s1 + $0x40] ss:$8 sps:$4 sm:$0xff] (!%p288_p2)   ;;  %v1467_v10 = vld [vmem:[%s1980_s1 + $0x54] ss:$8 sps:$4 sm:$0xff] (!%p288_p2)  }
   0x9   : > { %v1469_v11 = vld [vmem:[%s1980_s1 + $0x50] ss:$8 sps:$4 sm:$0xff] (!%p288_p2)   ;;  %v1470_v12 = vld [vmem:[%s1980_s1 + $0x64] ss:$8 sps:$4 sm:$0xff] (!%p288_p2)   ;;  %v1472_v15 = vld [vmem:[%s1980_s1 + $0x60] ss:$8 sps:$4 sm:$0xff] (!%p288_p2)  }
   0xa   : > { %v1473_v16 = vld [vmem:[%s1980_s1 + $0x74] ss:$8 sps:$4 sm:$0xff] (!%p288_p2)   ;;  %v1475_v17 = vld [vmem:[%s1980_s1 + $0x70] ss:$8 sps:$4 sm:$0xff] (!%p288_p2)   ;;  %v1476_v18 = vld [vmem:[%s1980_s1 + $0x84] ss:$8 sps:$4 sm:$0xff] (!%p288_p2)  }
   0xb   : > { %747 = vmatpush1.bf16.msra.mxu0 (!%p288_p2), %v1457_v3  ;;  %v1478_v19 = vld [vmem:[%s1980_s1 + $0x80] ss:$8 sps:$4 sm:$0xff] (!%p288_p2)   ;;  %v1479_v20 = vld [vmem:[%s1980_s1 + $0x94] ss:$8 sps:$4 sm:$0xff] (!%p288_p2)   ;;  %v1481_v21 = vld [vmem:[%s1980_s1 + $0x90] ss:$8 sps:$4 sm:$0xff] (!%p288_p2)  }
   0xc   : > { %748 = vmatprep.subr.bf16.mxu0 (!%p288_p2), %v1458_v4  ;;  %v1482_v22 = vld [vmem:[%s1980_s1 + $0xa4] ss:$8 sps:$4 sm:$0xff] (!%p288_p2)   ;;  %v1484_v23 = vld [vmem:[%s1980_s1 + $0xa0] ss:$8 sps:$4 sm:$0xff] (!%p288_p2)   ;;  %v1485_v24 = vld [vmem:[%s1980_s1 + $0xb4] ss:$8 sps:$4 sm:$0xff] (!%p288_p2)  }
   0xd   : > { %s1990_s10 = smov (!%p322_p3, %s1257_s10), 1  ;;  %v1487_v25 = vld [vmem:[%s1980_s1 + $0xb0] ss:$8 sps:$4 sm:$0xff]   ;;  %v1488_v26 = vld [vmem:[%s1980_s1 + $0xc4] ss:$8 sps:$4 sm:$0xff]   ;;  %vm1589_vm0 = vmmov 0  }
   0xe   : > { %s1367_s12 = sshll.u32 %s1990_s10, 4  ;;  %v1552_v27 = vld [vmem:[%s1982_s3 + $0x40] sm:$0xff]   ;;  %v1491_v30 = vld [vmem:[%s1980_s1 + $0xd4] ss:$8 sps:$4 sm:$0xff]   ;;  %v1554_v31 = vld [vmem:[%s1982_s3 + $0x48] sm:$0xff]   ;;  %vm1159_vm1 = vcmask 523264  }
   0xf   : > { %749 = vmatpush1.bf16.msra.mxu0 %v1460_v5  ;;  %s1687_s17 = scalar_lea.vmem %s1979_s0, %s1367_s12  ;;  %v1490_v28 = vld [vmem:[%s1980_s1 + $0xc0] ss:$8 sps:$4 sm:$0xff]   ;;  %1368 = vmatprep.subr.bf16.mxu1 %v1552_v27  ;;  %v1556_v33 = vld [vmem:[%s1982_s3 + $0x50] sm:$0xff]   ;;  %v1494_v35 = vld [vmem:[%s1980_s1 + $0xe4] ss:$8 sps:$4 sm:$0xff]   ;;  %s1264_s18 = sshll.u32 %s1990_s10, 3 }
  0x10   : > { %750 = vmatprep.subr.bf16.mxu0 %v1461_v6  ;;  %v1696_v13 = vld [vmem:[%s1687_s17] sm:$0xff]  ;;  %v1555_v32 = vld [vmem:[%s1982_s3 + $0x8] sm:$0xff]   ;;  %v1493_v34 = vld [vmem:[%s1980_s1 + $0xd0] ss:$8 sps:$4 sm:$0xff]   ;;  %s330_s23 = scalar_lea.vmem %s1988_s9, %s1264_s18 }
  0x11   : > { %v1266_v14 = vcombine.high %v1696_v13, %v1696_v13  ;;  %v1553_v29 = vld [vmem:[%s1982_s3] sm:$0xff]   ;;  %v1557_v36 = vld [vmem:[%s1982_s3 + $0x10] sm:$0xff]   ;;  %v1558_v37 = vld [vmem:[%s1982_s3 + $0x58] sm:$0xff]   ;;  %v1265_v48 = vcombine.low %v1696_v13, %v1696_v13 }
  0x12   : > { %1369 = vmatpush3.bf16.msra.mxu1 %v1553_v29  ;;  %v1496_v38 = vld [vmem:[%s1980_s1 + $0xe0] ss:$8 sps:$4 sm:$0xff]   ;;  %v1497_v39 = vld [vmem:[%s1980_s1 + $0xf4] ss:$8 sps:$4 sm:$0xff]   ;;  %v1499_v42 = vld [vmem:[%s1980_s1 + $0xf0] ss:$8 sps:$4 sm:$0xff]  }
  0x13   : > { %751 = vmatpush1.bf16.msra.mxu0 %v1463_v7  ;;  %776 = vmatprep.mubr.bf16.mxu0 %v1266_v14  ;;  %v1559_v40 = vld [vmem:[%s1982_s3 + $0x18] sm:$0xff]   ;;  %v1560_v41 = vld [vmem:[%s1982_s3 + $0x60] sm:$0xff]   ;;  %v1788_v44 = vld [vmem:[%s1687_s17 + $0x8] sm:$0xff] }
  0x14   : > { %752 = vmatprep.subr.bf16.mxu0 %v1464_v8  ;;  %1370 = vmatprep.subr.bf16.mxu1 %v1554_v31  ;;  %v1561_v43 = vld [vmem:[%s1982_s3 + $0x20] sm:$0xff]   ;;  %v1562_v46 = vld [vmem:[%s1982_s3 + $0x68] sm:$0xff]   ;;  %v1508_v49 = vld [vmem:[%s1980_s1 + $0x114] ss:$8 sps:$4 sm:$0xff]   ;;  %v1268_v51 = vcombine.high %v1788_v44, %v1788_v44 }
  0x15   : > { %v1505_v45 = vld [vmem:[%s1980_s1 + $0x104] ss:$8 sps:$4 sm:$0xff]   ;;  %v1503_v47 = vld [vmem:[%s1980_s1 + $0x100] ss:$8 sps:$4 sm:$0xff]   ;;  %v1506_v52 = vld [vmem:[%s1980_s1 + $0x110] ss:$8 sps:$4 sm:$0xff]  }
  0x16   : > { %1371 = vmatpush3.bf16.msra.mxu1 %v1555_v32  ;;  %v1563_v50 = vld [vmem:[%s1982_s3 + $0x28] sm:$0xff]   ;;  %v1514_v55 = vld [vmem:[%s1980_s1 + $0x134] ss:$8 sps:$4 sm:$0xff]   ;;  %v1512_v56 = vld [vmem:[%s1980_s1 + $0x130] ss:$8 sps:$4 sm:$0xff]  }
  0x17   : > { %753 = vmatpush1.bf16.msra.mxu0 %v1466_v9  ;;  %1372 = vmatprep.subr.bf16.mxu1 %v1556_v33  ;;  %v1511_v53 = vld [vmem:[%s1980_s1 + $0x124] ss:$8 sps:$4 sm:$0xff]   ;;  %v1509_v54 = vld [vmem:[%s1980_s1 + $0x120] ss:$8 sps:$4 sm:$0xff]   ;;  %v1520_v59 = vld [vmem:[%s1980_s1 + $0x154] ss:$8 sps:$4 sm:$0xff]  }
  0x18   : > { %754 = vmatprep.subr.bf16.mxu0 %v1467_v10  ;;  %v1517_v57 = vld [vmem:[%s1980_s1 + $0x144] ss:$8 sps:$4 sm:$0xff]   ;;  %v1515_v58 = vld [vmem:[%s1980_s1 + $0x140] ss:$8 sps:$4 sm:$0xff]   ;;  %v1518_v60 = vld [vmem:[%s1980_s1 + $0x150] ss:$8 sps:$4 sm:$0xff]  }
  0x19   : > { %v1523_v61 = vld [vmem:[%s1980_s1 + $0x164] ss:$8 sps:$4 sm:$0xff]   ;;  %v1521_v62 = vld [vmem:[%s1980_s1 + $0x160] ss:$8 sps:$4 sm:$0xff]   ;;  %v1526_v63 = vld [vmem:[%s1980_s1 + $0x174] ss:$8 sps:$4 sm:$0xff]  }
  0x1a   : > { %1373 = vmatpush3.bf16.msra.mxu1 %v1557_v36  ;;  %v1524_v0 = vld [vmem:[%s1980_s1 + $0x170] ss:$8 sps:$4 sm:$0xff]   ;;  %v1529_v1 = vld [vmem:[%s1980_s1 + $0x184] ss:$8 sps:$4 sm:$0xff]   ;;  %v1527_v2 = vld [vmem:[%s1980_s1 + $0x180] ss:$8 sps:$4 sm:$0xff]  }
  0x1b   : > { %755 = vmatpush1.bf16.msra.mxu0 %v1469_v11  ;;  %1374 = vmatprep.subr.bf16.mxu1 %v1558_v37  ;;  %v1532_v3 = vld [vmem:[%s1980_s1 + $0x194] ss:$8 sps:$4 sm:$0xff]   ;;  %v1530_v4 = vld [vmem:[%s1980_s1 + $0x190] ss:$8 sps:$4 sm:$0xff]   ;;  %v1535_v5 = vld [vmem:[%s1980_s1 + $0x1a4] ss:$8 sps:$4 sm:$0xff]  }
  0x1c   : > { %756 = vmatprep.subr.bf16.mxu0 %v1470_v12  ;;  %v1533_v6 = vld [vmem:[%s1980_s1 + $0x1a0] ss:$8 sps:$4 sm:$0xff]   ;;  %v1538_v7 = vld [vmem:[%s1980_s1 + $0x1b4] ss:$8 sps:$4 sm:$0xff]   ;;  %v1536_v8 = vld [vmem:[%s1980_s1 + $0x1b0] ss:$8 sps:$4 sm:$0xff]  }
  0x1d   : > { %v1541_v9 = vld [vmem:[%s1980_s1 + $0x1c4] ss:$8 sps:$4 sm:$0xff]   ;;  %v1539_v10 = vld [vmem:[%s1980_s1 + $0x1c0] ss:$8 sps:$4 sm:$0xff]   ;;  %v1544_v11 = vld [vmem:[%s1980_s1 + $0x1d4] ss:$8 sps:$4 sm:$0xff]  }
  0x1e   : > { %1375 = vmatpush3.bf16.msra.mxu1 %v1559_v40  ;;  %v1542_v12 = vld [vmem:[%s1980_s1 + $0x1d0] ss:$8 sps:$4 sm:$0xff]   ;;  %v1547_v13 = vld [vmem:[%s1980_s1 + $0x1e4] ss:$8 sps:$4 sm:$0xff]   ;;  %v1545_v14 = vld [vmem:[%s1980_s1 + $0x1e0] ss:$8 sps:$4 sm:$0xff]  }
  0x1f   : > { %757 = vmatpush1.bf16.msra.mxu0 %v1472_v15  ;;  %1376 = vmatprep.subr.bf16.mxu1 %v1560_v41  ;;  %v1550_v15 = vld [vmem:[%s1980_s1 + $0x1f4] ss:$8 sps:$4 sm:$0xff]   ;;  %v1569_v41 = vld [vmem:[%s1984_s5 + $0x8] sm:$0xff]  }
  0x20   : > { %758 = vmatprep.subr.bf16.mxu0 %v1473_v16  ;;  %v1548_v16 = vld [vmem:[%s1980_s1 + $0x1f0] ss:$8 sps:$4 sm:$0xff]  }
  0x22   : > { %1377 = vmatpush3.bf16.msra.mxu1 %v1561_v43  ;;  %v1571_v43 = vld [vmem:[%s1984_s5 + $0x18] sm:$0xff]  }
  0x23   : > { %759 = vmatpush1.bf16.msra.mxu0 %v1475_v17  ;;  %1378 = vmatprep.subr.bf16.mxu1 %v1562_v46  ;;  %v1267_v17 = vcombine.low %v1788_v44, %v1788_v44  ;;  %v1572_v44 = vld [vmem:[%s1984_s5 + $0x20] sm:$0xff]   ;;  %v1574_v46 = vld [vmem:[%s1984_s5 + $0x30] sm:$0xff]  }
  0x24   : > { %760 = vmatprep.subr.bf16.mxu0 %v1476_v18  ;;  %v1564_v18 = vld [vmem:[%s1982_s3 + $0x70] sm:$0xff]  }
  0x26   : > { %1379 = vmatpush3.bf16.msra.mxu1 %v1563_v50 }
  0x27   : > { %761 = vmatpush1.bf16.msra.mxu0 %v1478_v19  ;;  %v1565_v19 = vld [vmem:[%s1982_s3 + $0x30] sm:$0xff]   ;;  %1380 = vmatprep.subr.bf16.mxu1 %v1564_v18 }
  0x28   : > { %762 = vmatprep.subr.bf16.mxu0 %v1479_v20  ;;  %v1566_v20 = vld [vmem:[%s1982_s3 + $0x78] sm:$0xff]  }
  0x2a   : > { %1381 = vmatpush3.bf16.msra.mxu1 %v1565_v19 }
  0x2b   : > { %763 = vmatpush1.bf16.msra.mxu0 %v1481_v21  ;;  %v1567_v21 = vld [vmem:[%s1982_s3 + $0x38] sm:$0xff]   ;;  %1382 = vmatprep.subr.bf16.mxu1 %v1566_v20 }
  0x2c   : > { %764 = vmatprep.subr.bf16.mxu0 %v1482_v22  ;;  %v1588_v22 = vmov 0.0  }
  0x2e   : > { %1383 = vmatpush3.bf16.msra.mxu1 %v1567_v21 }
  0x2f   : > { %765 = vmatpush1.bf16.msra.mxu0 %v1484_v23  ;;  %1404 = vmatprep.subr.bf16.mxu1 %v1588_v22  ;;  %v400_v23 = vlaneseq }
  0x30   : > { %766 = vmatprep.subr.bf16.mxu0 %v1485_v24 }
  0x31   : > { %v401_v24 = vshrl.u32 %v400_v23, 7 }
  0x33   : > { %767 = vmatpush1.bf16.msra.mxu0 %v1487_v25  ;;  %v402_v25 = vsub.s32 0, %v401_v24  ;;  %v406_v27 = vsub.s32 1, %v401_v24 }
  0x34   : > { %768 = vmatprep.subr.bf16.mxu0 %v1488_v26  ;;  %v398_v26 = vld [vmem:[%s1981_s2] sm:$0x3] }
  0x35   : > { %v407_v29 = vrot.slane %v398_v26, %v406_v27 }
  0x37   : > { %769 = vmatpush1.bf16.msra.mxu0 %v1490_v28  ;;  %v403_v28 = vrot.slane %v398_v26, %v402_v25 }
  0x38   : > { %770 = vmatprep.subr.bf16.mxu0 %v1491_v30 }
  0x3b   : > { %771 = vmatpush1.bf16.msra.mxu0 %v1493_v34 }
  0x3c   : > { %772 = vmatprep.subr.bf16.mxu0 %v1494_v35 }
  0x3f   : > { %773 = vmatpush1.bf16.msra.mxu0 %v1496_v38 }
  0x40   : > { %774 = vmatprep.subr.bf16.mxu0 %v1497_v39  ;;  %v1568_v39 = vld [vmem:[%s1984_s5] sm:$0xff]  }
  0x43   : > { %775 = vmatpush1.bf16.msra.mxu0 %v1499_v42  ;;  %v1570_v42 = vld [vmem:[%s1984_s5 + $0x10] sm:$0xff]  }
  0x44   : > { %785 = vmatprep.subr.bf16.mxu0 %v1505_v45  ;;  %v1573_v45 = vld [vmem:[%s1984_s5 + $0x28] sm:$0xff]  }
  0x46   : > { %777 = vmatmul.mubr.bf16.vlgmr.msra.gmra.mrb[0].mxu0 %v1265_v48 }
  0x47   : > { %786 = vmatpush1.bf16.msra.mxu0 %v1503_v47  ;;  %817 = vmatprep.mubr.bf16.mxu0 %v1268_v51  ;;  %v1575_v47 = vld [vmem:[%s1984_s5 + $0x38] sm:$0xff]  }
  0x48   : > { %787 = vmatprep.subr.bf16.mxu0 %v1508_v49  ;;  %v1333_v49 = vld [vmem:[%s1983_s4] ss:$0 sm:$0xff] }
  0x4b   : > { %788 = vmatpush1.bf16.msra.mxu0 %v1506_v52 }
  0x4c   : > { %789 = vmatprep.subr.bf16.mxu0 %v1511_v53 }
  0x4f   : > { %790 = vmatpush1.bf16.msra.mxu0 %v1509_v54 }
  0x50   : > { %791 = vmatprep.subr.bf16.mxu0 %v1514_v55 }
  0x53   : > { %792 = vmatpush1.bf16.msra.mxu0 %v1512_v56  ;;  %v1576_v56 = vld [vmem:[%s1986_s7] sm:$0xff]  }
  0x54   : > { %793 = vmatprep.subr.bf16.mxu0 %v1517_v57 }
  0x57   : > { %794 = vmatpush1.bf16.msra.mxu0 %v1515_v58  ;;  %v1577_v58 = vld [vmem:[%s1986_s7 + $0x8] sm:$0xff]  }
  0x58   : > { %795 = vmatprep.subr.bf16.mxu0 %v1520_v59  ;;  %v1578_v59 = vld [vmem:[%s1986_s7 + $0x10] sm:$0xff]  }
  0x5b   : > { %796 = vmatpush1.bf16.msra.mxu0 %v1518_v60  ;;  %v1579_v60 = vld [vmem:[%s1986_s7 + $0x18] sm:$0xff]  }
  0x5c   : > { %797 = vmatprep.subr.bf16.mxu0 %v1523_v61  ;;  %v1350_v61 = vld [vmem:[%s1985_s6] ss:$0 sm:$0xff] }
  0x5f   : > { %798 = vmatpush1.bf16.msra.mxu0 %v1521_v62 }
  0x60   : > { %799 = vmatprep.subr.bf16.mxu0 %v1526_v63 }
  0x63   : > { %800 = vmatpush1.bf16.msra.mxu0 %v1524_v0 }
  0x64   : > { %801 = vmatprep.subr.bf16.mxu0 %v1529_v1 }
  0x67   : > { %802 = vmatpush1.bf16.msra.mxu0 %v1527_v2 }
  0x68   : > { %803 = vmatprep.subr.bf16.mxu0 %v1532_v3 }
  0x6b   : > { %804 = vmatpush1.bf16.msra.mxu0 %v1530_v4 }
  0x6c   : > { %805 = vmatprep.subr.bf16.mxu0 %v1535_v5  ;;  %v1359_v5 = vld [vmem:[%s1987_s8] ss:$0 sm:$0xff] }
  0x6f   : > { %806 = vmatpush1.bf16.msra.mxu0 %v1533_v6 }
  0x70   : > { %807 = vmatprep.subr.bf16.mxu0 %v1538_v7 }
  0x73   : > { %808 = vmatpush1.bf16.msra.mxu0 %v1536_v8 }
  0x74   : > { %809 = vmatprep.subr.bf16.mxu0 %v1541_v9 }
  0x77   : > { %810 = vmatpush1.bf16.msra.mxu0 %v1539_v10 }
  0x78   : > { %811 = vmatprep.subr.bf16.mxu0 %v1544_v11 }
  0x7b   : > { %812 = vmatpush1.bf16.msra.mxu0 %v1542_v12 }
  0x7c   : > { %813 = vmatprep.subr.bf16.mxu0 %v1547_v13 }
  0x7f   : > { %814 = vmatpush1.bf16.msra.mxu0 %v1545_v14 }
  0x80   : > { %815 = vmatprep.subr.bf16.mxu0 %v1550_v15 }
  0x83   : > { %816 = vmatpush1.bf16.msra.mxu0 %v1548_v16 }
  0x86   : > { %818 = vmatmul.mubr.bf16.vlgmr.msra.gmra.mrb[0].mxu0 %v1267_v17 }
 0x159   : > { %v819_v30 = vpop.f32.mrb[0].mxu0 }
 0x15a   : > { %v1436_v31 = vadd.f32 %v819_v30, %v403_v28  ;;  %v821_v32 = vpop.f32.mrb[1].mxu0 }
 0x15b   : > { %v1437_v33 = vadd.f32 %v821_v32, %v407_v29  ;;  %v823_v34 = vpop.f32.mrb[2].mxu0 }
 0x15c   : > { %v826_v35 = vmax.f32 %v1436_v31, 0.0  ;;  %v824_v36 = vpop.f32.mrb[3].mxu0 }
 0x15d   : > { %v827_v37 = vmax.f32 %v1437_v33, 0.0 }
 0x15e   : > { %v828_v40 = vpack.c.bf16 %v826_v35, %v826_v35 }
 0x15f   : > { %v829_v38 = vpack.c.bf16 %v827_v37, %v827_v37 }
 0x161   : > { %997 = vmatprep.mubr.bf16.mxu1 %v829_v38 }
 0x162   : > { %998 = vmatmul.mubr.bf16.vlgmr.msra.gmra.mrb[0].mxu1 %v828_v40 }
 0x163   : > { %1405 = vmatpush3.bf16.msra.mxu1 %v1568_v39  ;;  %1420 = vmatprep.mubr.msk.bf16.mxu1 %vm1589_vm0, %v1588_v22 }
 0x164   : > { %1406 = vmatprep.subr.bf16.mxu1 %v1588_v22 }
 0x167   : > { %1407 = vmatpush3.bf16.msra.mxu1 %v1569_v41 }
 0x168   : > { %1408 = vmatprep.subr.bf16.mxu1 %v1588_v22 }
 0x16b   : > { %1409 = vmatpush3.bf16.msra.mxu1 %v1570_v42 }
 0x16c   : > { %1410 = vmatprep.subr.bf16.mxu1 %v1588_v22 }
 0x16f   : > { %1411 = vmatpush3.bf16.msra.mxu1 %v1571_v43 }
 0x170   : > { %1412 = vmatprep.subr.bf16.mxu1 %v1588_v22 }
 0x173   : > { %1413 = vmatpush3.bf16.msra.mxu1 %v1572_v44 }
 0x174   : > { %1414 = vmatprep.subr.bf16.mxu1 %v1588_v22 }
 0x177   : > { %1415 = vmatpush3.bf16.msra.mxu1 %v1573_v45 }
 0x178   : > { %1416 = vmatprep.subr.bf16.mxu1 %v1588_v22 }
 0x17b   : > { %1417 = vmatpush3.bf16.msra.mxu1 %v1574_v46 }
 0x17c   : > { %1418 = vmatprep.subr.bf16.mxu1 %v1588_v22 }
 0x17f   : > { %1419 = vmatpush3.bf16.msra.mxu1 %v1575_v47 }
 0x180   : > { %1424 = vmatprep.subr.bf16.mxu1 %v1588_v22 }
 0x235   : > { %v1384_v48 = vpop.f32.mrb[0].mxu1 }
 0x236   : > { %v1385_v50 = vpop.f32.mrb[1].mxu1 }
 0x237   : > { %v1386_v51 = vadd.f32 %v1385_v50, %v1384_v48  ;;  %v1387_v52 = vpop.f32.mrb[2].mxu1 }
 0x238   : > { %v1388_v53 = vpop.f32.mrb[3].mxu1 }
 0x239   : > { %v1000_v54 = vadd.f32 %v1386_v51, %v1333_v49 }
 0x23b   : > { %v1005_v55 = vmax.f32 %v1000_v54, 0.0 }
 0x23d   : > { %v1006_v57 = vpack.c.bf16 %v1005_v55, %v1005_v55 }
 0x23f   : > { %1421 = vmatmul.mubr.bf16.vlgmr.msra.gmra.mrb[4].mxu1 %v1006_v57 }
 0x240   : > { %1425 = vmatpush3.bf16.msra.mxu1 %v1576_v56  ;;  %1432 = vmatprep.mubr.msk.bf16.mxu1 %vm1589_vm0, %v1588_v22 }
 0x241   : > { %1426 = vmatprep.subr.bf16.mxu1 %v1588_v22 }
 0x244   : > { %1427 = vmatpush3.bf16.msra.mxu1 %v1577_v58 }
 0x245   : > { %1428 = vmatprep.subr.bf16.mxu1 %v1588_v22 }
 0x248   : > { %1429 = vmatpush3.bf16.msra.mxu1 %v1578_v59 }
 0x249   : > { %1430 = vmatprep.subr.bf16.mxu1 %v1588_v22 }
 0x24c   : > { %1431 = vmatpush3.bf16.msra.mxu1 %v1579_v60 }
 0x312   : > { %v1112_v62 = vpop.f32.mrb[4].mxu1 }
 0x313   : > { %v1113_v63 = vadd.f32 %v1350_v61, %v1112_v62  ;;  %v1422_v0 = vpop.f32.mrb[5].mxu1 }
 0x314   : > { %v1115_v1 = vpop.f32.mrb[6].mxu1 }
 0x315   : > { %v1118_v2 = vmax.f32 %v1113_v63, 0.0  ;;  %v1423_v3 = vpop.f32.mrb[7].mxu1 }
 0x317   : > { %v1119_v4 = vpack.c.bf16 %v1118_v2, %v1118_v2 }
 0x319   : > { %1433 = vmatmul.mubr.msk.bf16.vlgmr.msra.gmra.mrb[8].mxu1 %vm1159_vm1, %v1119_v4 }
 0x3ec   : > { %v1197_v6 = vpop.f32.mrb[8].mxu1 }
 0x3ed   : > { %v1198_v7 = vadd.f32 %v1359_v5, %v1197_v6  ;;  %v1434_v8 = vpop.f32.mrb[9].mxu1 }
 0x3ee   : > { %v1200_v9 = vpop.f32.mrb[10].mxu1 }
 0x3ef   : > { %1203 = vst [vmem:[%s330_s23] sm:$0xff] %v1198_v7  ;;  %v1435_v10 = vpop.f32.mrb[11].mxu1 }
 0x3f0 PF: > { %s19_s30 = sadd.s32 1, %s1586_s30  }
 0x3f1   : > { %p16_p4 = scmp.ge.s32.totalorder %s19_s30, 4  }
 0x3f3   :  { %18 = sbr.rel (!%p16_p4) target bundleno = 1 (0x1), region = 86 }

</bundles_post_ra>
